<compile_context>
chip_gen: v7x
topology: tpu7x:2x2x1
jax: 0.10.0
libtpu: 0.0.40
codegen_flags: <defaults>
</compile_context>

<pallas_src>
import functools
import itertools

import numpy as np
import jax
import jax.numpy as jnp
from jax import lax
from jax.experimental import pallas as pl
from jax.experimental.pallas import tpu as pltpu


_NEG_PAD = -1e4  # sigmoid(_NEG_PAD) underflows to exactly 0 in f32


def _round_up(x, m):
    return (x + m - 1) // m * m


# ----------------------------- Pallas kernel ------------------------------- #

def _matcher_cost_kernel(logits_ref, onehot_ref, tsum_ref, pmask_ref, tmask_ref,
                         c_ref, acc_ref, *, w_class, w_dice, n_tgt):
    # logits_ref : (Qp, Cp)    f32   (resident across L tiles)
    # onehot_ref : (Cp, Np)    f32   one-hot of target labels (Np = 128 lane-pad)
    # tsum_ref   : (1, Np)     f32   per-target mask sums (precomputed)
    # pmask_ref  : (Qp, tL)    bf16  current L tile of pred masks
    # tmask_ref  : (Np, tL)    bf16  current L tile of target masks; row n_tgt = ones
    # c_ref      : (Qp, Np)    f32   output cost block
    # acc_ref    : (Qp, Np)    f32   scratch accumulator (sum over L of sig*tgt;
    #                                column n_tgt accumulates sum(sig))
    l = pl.program_id(1)

    @pl.when(l == 0)
    def _():
        acc_ref[...] = jnp.zeros_like(acc_ref)

    sig = jax.nn.sigmoid(pmask_ref[...].astype(jnp.float32))            # (Qp, tL)
    tgt = tmask_ref[...].astype(jnp.float32)                            # (Np, tL)
    # Contract on the last dims of both operands -> no transposes / XLU work.
    # Column n_tgt (all-ones target row) picks up sum(sig) over this tile.
    acc_ref[...] += lax.dot_general(
        sig, tgt, dimension_numbers=(((1,), (1,)), ((), ())),
        preferred_element_type=jnp.float32)

    @pl.when(l == pl.num_programs(1) - 1)
    def _():
        acc = acc_ref[...]                                              # (Qp, Np)
        # Extract sum(sig) from column n_tgt (masked lane reduce, once per batch).
        col = lax.broadcasted_iota(jnp.int32, acc.shape, 1)
        sig_sum = jnp.sum(jnp.where(col == n_tgt, acc, 0.0),
                          axis=-1, keepdims=True)                       # (Qp, 1)
        denom = sig_sum + tsum_ref[...]                                 # (Qp, Np)
        dice = (2.0 * acc + 1.0) / (denom + 1.0)

        # classification cost: softmax over classes, gathered via one-hot matmul
        logits = logits_ref[...].astype(jnp.float32)                    # (Qp, Cp)
        m = jnp.max(logits, axis=-1, keepdims=True)
        e = jnp.exp(logits - m)
        prob = e / jnp.sum(e, axis=-1, keepdims=True)
        cost_class = lax.dot_general(
            prob, onehot_ref[...],
            dimension_numbers=(((1,), (0,)), ((), ())),
            preferred_element_type=jnp.float32)                         # (Qp, Np)

        c_ref[...] = (w_dice * dice + w_class * cost_class).astype(c_ref.dtype)


def compute_cost_matrix(pred_logits, labels, pred_masks_flat, tgt_masks_flat,
                        *, cost_class=1.0, cost_dice=1.0, l_tile=2048):
    """Returns the (B, Q, N) matching cost matrix (to be maximized)."""
    B, Q, Cp = pred_logits.shape
    _, N, L = tgt_masks_flat.shape
    assert pred_masks_flat.shape == (B, Q, L)
    assert labels.shape == (B, N)

    n_pad = 128                     # lane-dense target dim (ones row lives at index N)
    assert N < n_pad, "number of targets must be < 128"
    q_pad = _round_up(Q, 8)
    tl = min(int(l_tile), _round_up(L, 128))     # lane-aligned L tile
    l_padded = _round_up(L, tl)

    # --- wrapper-side layout plumbing (tiny arrays / zero-cost padding) ----- #
    logits_p = jnp.zeros((B, q_pad, Cp), jnp.float32).at[:, :Q, :].set(
        pred_logits.astype(jnp.float32))

    class_ids = jnp.arange(Cp, dtype=jnp.int32)
    labels_p = jnp.full((B, n_pad), -1, jnp.int32).at[:, :N].set(labels.astype(jnp.int32))
    onehot = (labels_p[:, None, :] == class_ids[None, :, None]).astype(jnp.float32)

    tgt_sum = jnp.zeros((B, 1, n_pad), jnp.float32).at[:, 0, :N].set(
        jnp.sum(tgt_masks_flat.astype(jnp.float32), axis=-1))

    # bf16 mask inputs: halves HBM traffic on the dominant (B,Q,L)/(B,N,L) streams.
    pm = jnp.full((B, q_pad, l_padded), _NEG_PAD, jnp.bfloat16)
    pm = pm.at[:, :Q, :L].set(pred_masks_flat.astype(jnp.bfloat16))
    tm = jnp.zeros((B, n_pad, l_padded), jnp.bfloat16)
    tm = tm.at[:, :N, :L].set(tgt_masks_flat.astype(jnp.bfloat16))
    tm = tm.at[:, N, :].set(1.0)        # all-ones row -> sum(sig) via the MXU

    kernel = functools.partial(_matcher_cost_kernel,
                               w_class=float(cost_class),
                               w_dice=float(cost_dice),
                               n_tgt=N)

    grid = (B, l_padded // tl)
    c_pad = pl.pallas_call(
        kernel,
        grid=grid,
        in_specs=[
            pl.BlockSpec((None, q_pad, Cp), lambda b, l: (b, 0, 0)),
            pl.BlockSpec((None, Cp, n_pad), lambda b, l: (b, 0, 0)),
            pl.BlockSpec((None, 1, n_pad), lambda b, l: (b, 0, 0)),
            pl.BlockSpec((None, q_pad, tl), lambda b, l: (b, 0, l)),
            pl.BlockSpec((None, n_pad, tl), lambda b, l: (b, 0, l)),
        ],
        out_specs=pl.BlockSpec((None, q_pad, n_pad), lambda b, l: (b, 0, 0)),
        out_shape=jax.ShapeDtypeStruct((B, q_pad, n_pad), jnp.float32),
        scratch_shapes=[pltpu.VMEM((q_pad, n_pad), jnp.float32)],
        compiler_params=pltpu.CompilerParams(
            dimension_semantics=("parallel", "arbitrary"),
            vmem_limit_bytes=32 * 1024 * 1024),
    )(logits_p, onehot, tgt_sum, pm, tm)

    return c_pad[:, :Q, :N]


# -------------------------- host-side assignment --------------------------- #

def _linear_sum_assignment_max(C):
    # TODO(synk): Hungarian assignment (scipy linear_sum_assignment) is a
    # sequential host-side algorithm with no clean Pallas equivalent; exact
    # brute force is used here for the small synthetic sizes.
    Q, N = C.shape
    best_rows, best_val = None, -np.inf
    for perm in itertools.permutations(range(Q), N):
        v = sum(C[perm[j], j] for j in range(N))
        if v > best_val:
            best_val, best_rows = v, perm
    rows = np.asarray(best_rows)
    cols = np.arange(N)
    order = np.argsort(rows)
    return rows[order], cols[order]


# ------------------------------ module wrapper ------------------------------ #

class HungarianMatcherIFC:
    def __init__(self, cost_class=1.0, cost_dice=1.0, num_classes=15, n_future=2):
        assert cost_class != 0 or cost_dice != 0, "all costs cant be 0"
        self.cost_class = cost_class
        self.cost_dice = cost_dice
        self.num_classes = num_classes
        self.num_cum_classes = [0] + np.cumsum(np.array(num_classes) + 1).tolist()
        self.n_future = n_future

    def __call__(self, outputs, targets):
        pred_logits = outputs["pred_logits"]        # (B, Q, C+1)
        pred_masks = outputs["pred_masks"]          # (B, Q, T, H, W)
        B, Q, T, s_h, s_w = pred_masks.shape
        t_h, t_w = targets[0]["match_masks"].shape[-2:]
        # TODO(synk): bilinear-interpolation resize path (s_h,s_w)!=(t_h,t_w)
        # is not implemented; synthetic inputs use matching spatial sizes.
        assert (s_h, s_w) == (t_h, t_w)

        labels = jnp.stack([t["labels"] for t in targets]).astype(jnp.int32)   # (B, N)
        tgt_masks = jnp.stack([t["match_masks"] for t in targets])             # (B,N,T,H,W)
        N = tgt_masks.shape[1]
        L = T * t_h * t_w
        pmask_flat = pred_masks.reshape(B, Q, L)
        tgt_flat = tgt_masks.reshape(B, N, L)

        C = compute_cost_matrix(
            pred_logits, labels, pmask_flat, tgt_flat,
            cost_class=self.cost_class, cost_dice=self.cost_dice)
        C_np = np.asarray(jax.block_until_ready(C))

        indices = []
        for b in range(B):
            rows, cols = _linear_sum_assignment_max(C_np[b])
            indices.append((rows.astype(np.int64), cols.astype(np.int64)))
        return indices, C


# ------------------------------ reference check ----------------------------- #

def _reference_cost(pred_logits, labels, pmask_flat, tgt_flat, w_class, w_dice):
    logits = np.asarray(pred_logits, np.float64)
    prob = np.exp(logits - logits.max(-1, keepdims=True))
    prob = prob / prob.sum(-1, keepdims=True)
    B, Q, _ = logits.shape
    N = tgt_flat.shape[1]
    lab = np.asarray(labels)
    out = np.zeros((B, Q, N), np.float64)
    for b in range(B):
        cc = prob[b][:, lab[b]]                                        # (Q, N)
        sig = 1.0 / (1.0 + np.exp(-np.asarray(pmask_flat[b], np.float64)))
        tgt = np.asarray(tgt_flat[b], np.float64)
        num = 2.0 * sig @ tgt.T
        den = sig.sum(-1)[:, None] + tgt.sum(-1)[None, :]
        dice = (num + 1.0) / (den + 1.0)
        out[b] = w_dice * dice + w_class * cc
    return out


# ----------------------------------- main ----------------------------------- #

if __name__ == "__main__":
    key = jax.random.PRNGKey(0)
    B, Q, num_classes, T, H, W, N = 2, 8, 15, 2, 16, 16, 3
    Cp = num_classes + 1

    k1, k2, k3, k4 = jax.random.split(key, 4)
    pred_logits = jax.random.normal(k1, (B, Q, Cp), jnp.float32)
    pred_masks = jax.random.normal(k2, (B, Q, T, H, W), jnp.float32)
    labels = jax.random.randint(k3, (B, N), 0, num_classes, jnp.int32)
    match_masks = (jax.random.uniform(k4, (B, N, T, H, W)) > 0.5).astype(jnp.float32)

    outputs = {"pred_logits": pred_logits, "pred_masks": pred_masks}
    targets = [{"labels": labels[b], "match_masks": match_masks[b]} for b in range(B)]

    matcher = HungarianMatcherIFC(cost_class=1.0, cost_dice=1.0,
                                  num_classes=num_classes, n_future=T)
    indices, C = matcher(outputs, targets)
    C = jax.block_until_ready(C)

    # Verify against a pure-numpy reference computed from the same bf16-quantized
    # mask inputs the kernel consumes (targets are 0/1 -> exact in bf16).
    pm_q = np.asarray(pred_masks.astype(jnp.bfloat16).astype(jnp.float32))
    tm_q = np.asarray(match_masks.astype(jnp.bfloat16).astype(jnp.float32))
    C_ref = _reference_cost(pred_logits, labels,
                            pm_q.reshape(B, Q, T * H * W),
                            tm_q.reshape(B, N, T * H * W),
                            matcher.cost_class, matcher.cost_dice)
    np.testing.assert_allclose(np.asarray(C), C_ref, rtol=1e-3, atol=1e-3)

    # sanity: one (row, col) pair per target, rows unique
    for rows, cols in indices:
        assert rows.shape == (N,) and cols.shape == (N,)
        assert len(set(rows.tolist())) == N

    print("KERNEL_OK")
</pallas_src>

<mosaic_0001>
module attributes {stable_mosaic.version = 11 : i64} {
  func.func @_matcher_cost_kernel(%arg0: i32, %arg1: i32, %arg2: memref<1x8x16xf32, #tpu.memory_space<vmem>>, %arg3: memref<1x16x128xf32, #tpu.memory_space<vmem>>, %arg4: memref<1x1x128xf32, #tpu.memory_space<vmem>>, %arg5: memref<1x8x512xbf16, #tpu.memory_space<vmem>>, %arg6: memref<1x128x512xbf16, #tpu.memory_space<vmem>>, %arg7: memref<1x8x128xf32, #tpu.memory_space<vmem>>, %arg8: memref<8x128xf32, #tpu.memory_space<vmem>>) attributes {dimension_semantics = [#tpu.dimension_semantics<parallel>, #tpu.dimension_semantics<arbitrary>], iteration_bounds = array<i64: 2, 1>, scalar_prefetch = 0 : i64, scratch_operands = 1 : i64, tpu.core_type = #tpu.core_type<tc>, window_params = [{transform_indices = @transform_0, window_bounds = array<i64: 1, 8, 16>}, {transform_indices = @transform_1, window_bounds = array<i64: 1, 16, 128>}, {transform_indices = @transform_2, window_bounds = array<i64: 1, 1, 128>}, {transform_indices = @transform_3, window_bounds = array<i64: 1, 8, 512>}, {transform_indices = @transform_4, window_bounds = array<i64: 1, 128, 512>}, {transform_indices = @transform_5, window_bounds = array<i64: 1, 8, 128>}]} {
    %c0_i32 = arith.constant 0 : i32
    %0 = arith.cmpi eq, %arg1, %c0_i32 : i32
    %1 = arith.extui %0 : i1 to i32
    %c0_i32_0 = arith.constant 0 : i32
    %2 = arith.cmpi ne, %1, %c0_i32_0 : i32
    scf.if %2 {
      %cst_13 = arith.constant 0.000000e+00 : f32
      %21 = vector.broadcast %cst_13 : f32 to vector<8x128xf32>
      %c0_14 = arith.constant 0 : index
      %c0_15 = arith.constant 0 : index
      %22 = vector.load %arg8[%c0_14, %c0_15] : memref<8x128xf32, #tpu.memory_space<vmem>>, vector<8x128xf32>
      tpu.vector_store %arg8[%c0_14, %c0_15], %21 {strides = array<i32>} : memref<8x128xf32, #tpu.memory_space<vmem>>, vector<8x128xf32>,
    } else {
    }
    %c0 = arith.constant 0 : index
    %c0_1 = arith.constant 0 : index
    %c0_2 = arith.constant 0 : index
    %3 = vector.load %arg5[%c0, %c0_1, %c0_2] : memref<1x8x512xbf16, #tpu.memory_space<vmem>>, vector<1x8x512xbf16>
    %4 = vector.shape_cast %3 : vector<1x8x512xbf16> to vector<8x512xbf16>
    %5 = arith.extf %4 : vector<8x512xbf16> to vector<8x512xf32>
    %6 = arith.negf %5 : vector<8x512xf32>
    %7 = math.exp %6 : vector<8x512xf32>
    %cst = arith.constant 1.000000e+00 : f32
    %8 = vector.broadcast %cst : f32 to vector<8x512xf32>
    %9 = arith.addf %8, %7 : vector<8x512xf32>
    %10 = arith.divf %8, %9 : vector<8x512xf32>
    %c0_3 = arith.constant 0 : index
    %c0_4 = arith.constant 0 : index
    %c0_5 = arith.constant 0 : index
    %11 = vector.load %arg6[%c0_3, %c0_4, %c0_5] : memref<1x128x512xbf16, #tpu.memory_space<vmem>>, vector<1x128x512xbf16>
    %12 = vector.shape_cast %11 : vector<1x128x512xbf16> to vector<128x512xbf16>
    %13 = arith.extf %12 : vector<128x512xbf16> to vector<128x512xf32>
    %c0_6 = arith.constant 0 : index
    %c0_7 = arith.constant 0 : index
    %14 = vector.load %arg8[%c0_6, %c0_7] : memref<8x128xf32, #tpu.memory_space<vmem>>, vector<8x128xf32>
    %cst_8 = arith.constant dense<0.000000e+00> : vector<8x128xf32>
    %15 = tpu.matmul %10, %13, %cst_8 {dimension_numbers = #tpu.dot_dimension_numbers<[1], [1], [0], [0], [0, 0, 1, 0], [], []>} : vector<8x512xf32>, vector<128x512xf32>, vector<8x128xf32> -> vector<8x128xf32>
    %16 = arith.addf %14, %15 : vector<8x128xf32>
    %c0_9 = arith.constant 0 : index
    %c0_10 = arith.constant 0 : index
    %17 = vector.load %arg8[%c0_9, %c0_10] : memref<8x128xf32, #tpu.memory_space<vmem>>, vector<8x128xf32>
    tpu.vector_store %arg8[%c0_9, %c0_10], %16 {strides = array<i32>} : memref<8x128xf32, #tpu.memory_space<vmem>>, vector<8x128xf32>,
    %c0_i32_11 = arith.constant 0 : i32
    %18 = arith.cmpi eq, %arg1, %c0_i32_11 : i32
    %19 = arith.extui %18 : i1 to i32
    %c0_i32_12 = arith.constant 0 : i32
    %20 = arith.cmpi ne, %19, %c0_i32_12 : i32
    scf.if %20 {
      %c0_13 = arith.constant 0 : index
      %c0_14 = arith.constant 0 : index
      %21 = vector.load %arg8[%c0_13, %c0_14] : memref<8x128xf32, #tpu.memory_space<vmem>>, vector<8x128xf32>
      %22 = tpu.iota {dimensions = array<i32: 1>} : vector<8x128xi32>
      %c3_i32 = arith.constant 3 : i32
      %23 = vector.broadcast %c3_i32 : i32 to vector<8x128xi32>
      %24 = arith.cmpi eq, %22, %23 : vector<8x128xi32>
      %cst_15 = arith.constant 0.000000e+00 : f32
      %25 = vector.broadcast %cst_15 : f32 to vector<8x128xf32>
      %26 = arith.select %24, %21, %25 : vector<8x128xi1>, vector<8x128xf32>
      %cst_16 = arith.constant dense<0.000000e+00> : vector<8xf32>
      %27 = vector.multi_reduction <add>, %26, %cst_16 [1] : vector<8x128xf32> to vector<8xf32>
      %28 = vector.shape_cast %27 : vector<8xf32> to vector<8x1xf32>
      %c0_17 = arith.constant 0 : index
      %c0_18 = arith.constant 0 : index
      %c0_19 = arith.constant 0 : index
      %29 = vector.load %arg4[%c0_17, %c0_18, %c0_19] : memref<1x1x128xf32, #tpu.memory_space<vmem>>, vector<1x1x128xf32>
      %30 = vector.shape_cast %29 : vector<1x1x128xf32> to vector<1x128xf32>
      %31 = vector.broadcast %28 : vector<8x1xf32> to vector<8x128xf32>
      %32 = vector.broadcast %30 : vector<1x128xf32> to vector<8x128xf32>
      %33 = arith.addf %31, %32 : vector<8x128xf32>
      %cst_20 = arith.constant 2.000000e+00 : f32
      %34 = vector.broadcast %cst_20 : f32 to vector<8x128xf32>
      %35 = arith.mulf %34, %21 : vector<8x128xf32>
      %cst_21 = arith.constant 1.000000e+00 : f32
      %36 = vector.broadcast %cst_21 : f32 to vector<8x128xf32>
      %37 = arith.addf %35, %36 : vector<8x128xf32>
      %cst_22 = arith.constant 1.000000e+00 : f32
      %38 = vector.broadcast %cst_22 : f32 to vector<8x128xf32>
      %39 = arith.addf %33, %38 : vector<8x128xf32>
      %40 = arith.divf %37, %39 : vector<8x128xf32>
      %c0_23 = arith.constant 0 : index
      %c0_24 = arith.constant 0 : index
      %c0_25 = arith.constant 0 : index
      %41 = vector.load %arg2[%c0_23, %c0_24, %c0_25] : memref<1x8x16xf32, #tpu.memory_space<vmem>>, vector<1x8x16xf32>
      %42 = vector.shape_cast %41 : vector<1x8x16xf32> to vector<8x16xf32>
      %cst_26 = arith.constant dense<0xFF800000> : vector<8xf32>
      %43 = vector.multi_reduction <maximumf>, %42, %cst_26 [1] : vector<8x16xf32> to vector<8xf32>
      %44 = vector.shape_cast %43 : vector<8xf32> to vector<8x1xf32>
      %45 = vector.broadcast %44 : vector<8x1xf32> to vector<8x16xf32>
      %46 = arith.subf %42, %45 : vector<8x16xf32>
      %47 = math.exp %46 : vector<8x16xf32>
      %cst_27 = arith.constant dense<0.000000e+00> : vector<8xf32>
      %48 = vector.multi_reduction <add>, %47, %cst_27 [1] : vector<8x16xf32> to vector<8xf32>
      %49 = vector.shape_cast %48 : vector<8xf32> to vector<8x1xf32>
      %50 = vector.broadcast %49 : vector<8x1xf32> to vector<8x16xf32>
      %51 = arith.divf %47, %50 : vector<8x16xf32>
      %c0_28 = arith.constant 0 : index
      %c0_29 = arith.constant 0 : index
      %c0_30 = arith.constant 0 : index
      %52 = vector.load %arg3[%c0_28, %c0_29, %c0_30] : memref<1x16x128xf32, #tpu.memory_space<vmem>>, vector<1x16x128xf32>
      %53 = vector.shape_cast %52 : vector<1x16x128xf32> to vector<16x128xf32>
      %cst_31 = arith.constant dense<0.000000e+00> : vector<8x128xf32>
      %54 = tpu.matmul %51, %53, %cst_31 {dimension_numbers = #tpu.dot_dimension_numbers<[1], [0], [0], [1], [0, 0, 1, 1], [], []>} : vector<8x16xf32>, vector<16x128xf32>, vector<8x128xf32> -> vector<8x128xf32>
      %cst_32 = arith.constant 1.000000e+00 : f32
      %55 = vector.broadcast %cst_32 : f32 to vector<8x128xf32>
      %56 = arith.mulf %55, %40 : vector<8x128xf32>
      %cst_33 = arith.constant 1.000000e+00 : f32
      %57 = vector.broadcast %cst_33 : f32 to vector<8x128xf32>
      %58 = arith.mulf %57, %54 : vector<8x128xf32>
      %59 = arith.addf %56, %58 : vector<8x128xf32>
      %c0_34 = arith.constant 0 : index
      %c0_35 = arith.constant 0 : index
      %c0_36 = arith.constant 0 : index
      %60 = vector.load %arg7[%c0_34, %c0_35, %c0_36] : memref<1x8x128xf32, #tpu.memory_space<vmem>>, vector<1x8x128xf32>
      %61 = vector.shape_cast %60 : vector<1x8x128xf32> to vector<8x128xf32>
      %62 = vector.shape_cast %59 : vector<8x128xf32> to vector<1x8x128xf32>
      tpu.vector_store %arg7[%c0_34, %c0_35, %c0_36], %62 {strides = array<i32>} : memref<1x8x128xf32, #tpu.memory_space<vmem>>, vector<1x8x128xf32>,
    } else {
    }
    return
  }
  func.func @transform_0(%arg0: i32, %arg1: i32) -> (i32, i32, i32) {
    %c0_i32 = arith.constant 0 : i32
    %c0_i32_0 = arith.constant 0 : i32
    %c0_i32_1 = arith.constant 0 : i32
    return %arg0, %c0_i32, %c0_i32_0 : i32, i32, i32
  }
  func.func @transform_1(%arg0: i32, %arg1: i32) -> (i32, i32, i32) {
    %c0_i32 = arith.constant 0 : i32
    %c0_i32_0 = arith.constant 0 : i32
    %c0_i32_1 = arith.constant 0 : i32
    return %arg0, %c0_i32, %c0_i32_0 : i32, i32, i32
  }
  func.func @transform_2(%arg0: i32, %arg1: i32) -> (i32, i32, i32) {
    %c0_i32 = arith.constant 0 : i32
    %c0_i32_0 = arith.constant 0 : i32
    %c0_i32_1 = arith.constant 0 : i32
    return %arg0, %c0_i32, %c0_i32_0 : i32, i32, i32
  }
  func.func @transform_3(%arg0: i32, %arg1: i32) -> (i32, i32, i32) {
    %c0_i32 = arith.constant 0 : i32
    %c0_i32_0 = arith.constant 0 : i32
    return %arg0, %c0_i32, %arg1 : i32, i32, i32
  }
  func.func @transform_4(%arg0: i32, %arg1: i32) -> (i32, i32, i32) {
    %c0_i32 = arith.constant 0 : i32
    %c0_i32_0 = arith.constant 0 : i32
    return %arg0, %c0_i32, %arg1 : i32, i32, i32
  }
  func.func @transform_5(%arg0: i32, %arg1: i32) -> (i32, i32, i32) {
    %c0_i32 = arith.constant 0 : i32
    %c0_i32_0 = arith.constant 0 : i32
    %c0_i32_1 = arith.constant 0 : i32
    return %arg0, %c0_i32, %c0_i32_0 : i32, i32, i32
  }
}

</mosaic_0001>

<bundles_post_ra>
// kernel: tpu_custom_call.1
= control target key start
LH: loop header
LB: loop body
LE: loop exit
PB: predicated region body
PF: predicated region fallthrough
CT: control target
= control target key end

     0   :  { %s1857_s0 = inlined_call_operand.hbm [shape: f32[2,8,16], index: 0, kind: input, shape index: {}]   ;;  %s1858_s1 = inlined_call_operand.hbm [shape: f32[2,16,128], index: 1, kind: input, shape index: {}]   ;;  %s1859_s2 = inlined_call_operand.vmem [shape: f32[2,1,128], index: 2, kind: input, shape index: {}]   ;;  %s1860_s3 = inlined_call_operand.hbm [shape: bf16[2,8,512], index: 3, kind: input, shape index: {}]   ;;  %s1861_s4 = inlined_call_operand.hbm [shape: bf16[2,128,512], index: 4, kind: input, shape index: {}]   ;;  %s1862_s5 = inlined_call_operand.hbm [shape: f32[2,8,128], index: 5, kind: output, shape index: {}]  }
   0x1   :  { %1873 = sst [smem:[#allocation20_spill]] %s1857_s0 }
   0x2   :  { %1874 = sst [smem:[#allocation21_spill]] %s1858_s1 }
   0x3   :  { %10 = vsyncpa [#allocation4], 0 }
   0x4   :  { %12 = vsyncpa [#allocation4 + $0x1], 0 }
   0x5   :  { %13 = vsyncpa [#allocation7], 0 }
   0x6   :  { %15 = vsyncpa [#allocation7 + $0x1], 0 }
   0x7   :  { %16 = vsyncpa [#allocation10], 0 }
   0x8   :  { %18 = vsyncpa [#allocation10 + $0x1], 0 }
   0x9   :  { %19 = vsyncpa [#allocation5], 0 }
   0xa   :  { %21 = vsyncpa [#allocation5 + $0x1], 0  ;;  %s1503_s18 = smov 0   ;;  %s1505_s19 = smov 0  }
   0xb   :  { %s1507_s20 = smov 0   ;;  %s1509_s21 = smov 0  }
   0xc   :  { %s1511_s22 = smov 0   ;;  %s1513_s23 = smov 0  }
   0xd LB: > { %1875 = sst [smem:[#allocation16_spill]] %s1447_s20  ;;  %s1534_s24 = sadd.s32 4294967295, %s1459_s23   ;;  %s1459_s23 = sphi %s1513_s23, %s27_s23   ;;  %s1455_s22 = sphi %s1511_s22, %s1903_s22   ;;  %s1451_s21 = sphi %s1509_s21, %s1902_s21   ;;  %s1447_s20 = sphi %s1507_s20, %s1898_s20   ;;  %s1443_s19 = sphi %s1505_s19, %s1901_s19   ;;  %s1439_s18 = sphi %s1503_s18, %s1900_s18  }
   0xe   : > { %1876 = sst [smem:[#allocation17_spill]] %s1459_s23  ;;  %s952_s25 = sadd.s32 4294967294, %s1459_s23  }
   0xf   : > { %s39_s26 = sadd.s32 1, %s1455_s22  ;;  %s46_s27 = sadd.s32 1, %s1447_s20 }
  0x10   : > { %p41_p0 = scmp.ge.s32.totalorder %s39_s26, 2  ;;  %p53_p1 = scmp.ne.s32.totalorder %s1447_s20, %s1443_s19 }
  0x11   : > { %p54_p2 = scmp.eq.s32.totalorder %s1459_s23, 0  ;;  %p59_p3 = scmp.ne.s32.totalorder %s1443_s19, %s1439_s18 }
  0x12   : > { %s1905_s26 = smov (%p41_p0, %s39_s26), 0  ;;  %p60_p5 = scmp.eq.s32.totalorder %s1534_s24, 0 }
  0x13   : > { %1877 = sst [smem:[#allocation18_spill]] %s1905_s26  ;;  %p1546_p4 = por %p54_p2, %p53_p1 }
  0x14   : > { %s43_s29 = ssub.s32 %s1455_s22, %s1905_s26  ;;  %p191_p6 = scmp.eq.s32.totalorder %s1534_s24, 1 }
  0x15   : > { %p44_p7 = scmp.eq.s32.totalorder %s43_s29, 0  ;;  %p1554_p8 = por %p60_p5, %p59_p3 }
  0x16   : > { %p1558_p9 = por %p191_p6, %p53_p1  ;;  %p197_p10 = scmp.eq.s32.totalorder %s952_s25, 1 }
  0x17   : > { %s1879_s30 = scalar_select %p1554_p8, 1, 0 }
  0x18   : > { %s1880_s6 = scalar_select %p1558_p9, 1, 0 }
  0x19   : > { %s1563_s7 = scalar_select %p44_p7, %s1447_s20, %s46_s27  }
  0x1a   : > { %p1565_p11 = por %p197_p10, %p59_p3  ;;  %p1122_p13 = scmp.lt.s32.totalorder %s1459_s23, 2 }
  0x1b   : > { %1881 = sst [smem:[#allocation19_spill]] %s1563_s7  ;;  %s1572_s9 = sand.u32 1, %s1447_s20  }
  0x1c   : > { %s1882_s8 = scalar_select %p1565_p11, 1, 0 }
  0x1d   : > { %s235_s10 = sand.u32 1, %s1459_s23   ;;  %s1863_s11 = sshll.u32 %s1572_s9, 4 }
  0x1e   : > { %p1578_p0 = pnand %p1122_p13, %p1546_p4  ;;  %s1864_s13 = sshll.u32 %s1455_s22, 8 }
  0x1f   : > { %s1884_s1 = sld [smem:[#allocation21_spill]]  ;;  %s239_s17 = scalar_lea.vmem [#allocation6], %s1863_s11 }
  0x20   : > { %s1883_s12 = scalar_select %p1578_p0, 1, 0 }
  0x21   : > { %s246_s25 = sshll.u32 %s239_s17, 4  ;;  %s1594_s27 = scalar_lea.sflag [#allocation7], %s235_s10  ;;  %s1592_s25 = int_to_ptr.vmem [resolvable:$true] %s246_s25 }
  0x22   : > { %p1600_p2 = pneg %p1578_p0 }
  0x25   : > { %s1588_s16 = scalar_lea.hbm %s1884_s1, %s1864_s13  ;;  %s1254_s11 = scalar_lea.hbm %s1884_s1, 512 }
  0x26   : > { %s1249_s28 = scalar_lea.hbm %s1588_s16, 256  ;;  %p1255_p5 = scmp.lt.u32.totalorder %s1588_s16, %s1884_s1 }
  0x27   : > { %p1250_p1 = scmp.ne.s32.totalorder %s1588_s16, %s1249_s28  ;;  %p1256_p6 = scmp.lt.u32.totalorder %s1254_s11, %s1249_s28 }
  0x28   : > { %p1258_p10 = scmp.lt.u32.totalorder %s1249_s28, %s1588_s16 }
  0x29   : > { %p1252_p3 = pnand %p1600_p2, %p1250_p1  ;;  %p1257_p7 = por %p1256_p6, %p1255_p5 }
  0x2b   : > { %p1253_p4 = pneg %p1252_p3  ;;  %p1259_p13 = por %p1258_p10, %p1257_p7 }
  0x2d   : > { %p1260_p12 = pnand %p1259_p13, %p1253_p4 }
  0x2f   : > { %1263 = shalt.err (!%p1260_p12)
}
  0x30   : > { %s1264_s10 = scalar_lea.vmem %s1592_s25, 256  ;;  %s1461_s14 = smov [#allocation6]  }
  0x31   : > { %p1265_p1 = scmp.ne.s32.totalorder %s1592_s25, %s1264_s10  ;;  %s1269_s15 = sshll.u32 %s1461_s14, 4  ;;  %s1270_s15 = int_to_ptr.vmem [resolvable:$false] %s1269_s15 }
  0x32   : > { %s1271_s13 = scalar_lea.vmem %s1270_s15, 512  ;;  %p1272_p9 = scmp.lt.s32.totalorder %s1592_s25, %s1270_s15 }
  0x33   : > { %p1267_p3 = pnand %p1265_p1, %p1600_p2  ;;  %p1273_p8 = scmp.lt.s32.totalorder %s1271_s13, %s1264_s10 }
  0x35   : > { %p1268_p11 = pneg %p1267_p3  ;;  %p1274_p5 = por %p1273_p8, %p1272_p9 }
  0x37   : > { %p1275_p6 = pnand %p1274_p5, %p1268_p11 }
  0x39   : > { %1278 = shalt.err (!%p1275_p6)
}
  0x3a   : > { %s1462_s11 = smov 128   ;;  %s1463_s28 = smov 8  }
  0x3b   : > { %1111 = dma.hbm_to_vmem [thread:$0]  (!%p1578_p0), %s1588_s16, 256, %s1592_s25, %s1594_s27, %s1462_s11, %s1462_s11, %s1463_s28  }
  0x3c   : > { %p966_p12 = scmp.ge.s32.totalorder %s1459_s23, 1  ;;  %p304_p4 = scmp.lt.s32.totalorder %s1459_s23, 3 }
  0x3d   : > { %s955_s10 = sshll.u32 %s1572_s9, 3  ;;  %s956_s14 = sshll.u32 %s1455_s22, 7 }
  0x3e   : > { %p1626_p8 = pnand %p966_p12, %p304_p4  ;;  %s1887_s0 = sld [smem:[#allocation20_spill]] }
  0x3f   : > { %s221_s26 = scalar_lea.vmem [#allocation3], %s955_s10  ;;  %s1888_s16 = sshll.u32 %s1455_s22, 8 }
  0x40   : > { %s1886_s17 = scalar_select %p1626_p8, 1, 0 }
  0x41   : > { %s228_s7 = sshll.u32 %s221_s26, 4  ;;  %s1644_s28 = scalar_lea.hbm %s1860_s3, %s1888_s16  ;;  %s1637_s7 = int_to_ptr.vmem [resolvable:$true] %s228_s7 }
  0x42   : > { %s218_s20 = scalar_lea.sflag [#allocation4], %s1572_s9 }
  0x44   : > { %s1635_s1 = scalar_lea.hbm %s1887_s0, %s956_s14  ;;  %s1284_s13 = scalar_lea.hbm %s1887_s0, 256 }
  0x45   : > { %s1279_s23 = scalar_lea.hbm %s1635_s1, 128  ;;  %p1285_p10 = scmp.lt.u32.totalorder %s1635_s1, %s1887_s0 }
  0x46   : > { %p1280_p9 = scmp.ne.s32.totalorder %s1635_s1, %s1279_s23  ;;  %p1286_p13 = scmp.lt.u32.totalorder %s1284_s13, %s1279_s23 }
  0x47   : > { %p1288_p3 = scmp.lt.u32.totalorder %s1279_s23, %s1635_s1 }
  0x48   : > { %p1282_p11 = pnand %p1280_p9, %p1600_p2  ;;  %p1287_p1 = por %p1286_p13, %p1285_p10 }
  0x4a   : > { %p1283_p7 = pneg %p1282_p11  ;;  %p1289_p5 = por %p1288_p3, %p1287_p1 }
  0x4c   : > { %p1290_p6 = pnand %p1289_p5, %p1283_p7 }
  0x4e   : > { %1293 = shalt.err (!%p1290_p6)
}
  0x4f   : > { %s1294_s16 = scalar_lea.vmem %s1637_s7, 128  ;;  %s1464_s25 = smov [#allocation3]  }
  0x50   : > { %p1295_p12 = scmp.ne.s32.totalorder %s1637_s7, %s1294_s16  ;;  %s1299_s11 = sshll.u32 %s1464_s25, 4  ;;  %s1300_s11 = int_to_ptr.vmem [resolvable:$false] %s1299_s11 }
  0x51   : > { %s1301_s14 = scalar_lea.vmem %s1300_s11, 256  ;;  %p1302_p11 = scmp.lt.s32.totalorder %s1637_s7, %s1300_s11 }
  0x52   : > { %p1297_p4 = pnand %p1295_p12, %p1600_p2  ;;  %p1303_p8 = scmp.lt.s32.totalorder %s1301_s14, %s1294_s16 }
  0x54   : > { %p1298_p9 = pneg %p1297_p4  ;;  %p1304_p10 = por %p1303_p8, %p1302_p11 }
  0x56   : > { %p1305_p13 = pnand %p1304_p10, %p1298_p9 }
  0x58   : > { %1308 = shalt.err (!%p1305_p13)
}
  0x59   : > { %1108 = dma.hbm_to_vmem [thread:$0]  (!%p1578_p0), %s1635_s1, 128, %s1637_s7, %s218_s20  }
  0x5a   : > { %s1889_s23 = sshll.u32 %s1572_s9, 4  ;;  %s963_s10 = sshll.u32 %s1572_s9, 8 }
  0x5b   : > { %s266_s15 = scalar_lea.vmem [#allocation8], %s1889_s23  ;;  %s1309_s26 = scalar_lea.hbm %s1644_s28, 256 }
  0x5c   : > { %s276_s13 = sshll.u32 %s266_s15, 4  ;;  %p1310_p8 = scmp.ne.s32.totalorder %s1644_s28, %s1309_s26  ;;  %s277_s13 = int_to_ptr.vmem [resolvable:$true] %s276_s13 }
  0x5d   : > { %s1314_s11 = scalar_lea.hbm %s1860_s3, 512  ;;  %p1315_p3 = scmp.lt.u32.totalorder %s1644_s28, %s1860_s3 }
  0x5e   : > { %p1312_p7 = pnand %p1310_p8, %p1600_p2  ;;  %p1316_p5 = scmp.lt.u32.totalorder %s1314_s11, %s1309_s26 }
  0x5f   : > { %p1318_p12 = scmp.lt.u32.totalorder %s1309_s26, %s1644_s28 }
  0x60   : > { %p1313_p1 = pneg %p1312_p7  ;;  %p1317_p6 = por %p1316_p5, %p1315_p3 }
  0x62   : > { %p1319_p4 = por %p1318_p12, %p1317_p6 }
  0x64   : > { %p1320_p9 = pnand %p1319_p4, %p1313_p1 }
  0x66   : > { %1323 = shalt.err (!%p1320_p9)
}
  0x67   : > { %s1324_s1 = scalar_lea.vmem %s277_s13, 256  ;;  %s1465_s20 = smov [#allocation8]  }
  0x68   : > { %p1325_p11 = scmp.ne.s32.totalorder %s277_s13, %s1324_s1  ;;  %s1329_s7 = sshll.u32 %s1465_s20, 4  ;;  %s1330_s7 = int_to_ptr.vmem [resolvable:$false] %s1329_s7 }
  0x69   : > { %s1331_s23 = scalar_lea.vmem %s1330_s7, 512  ;;  %p1332_p8 = scmp.lt.s32.totalorder %s277_s13, %s1330_s7 }
  0x6a   : > { %p1327_p10 = pnand %p1325_p11, %p1600_p2  ;;  %p1333_p7 = scmp.lt.s32.totalorder %s1331_s23, %s1324_s1 }
  0x6c   : > { %p1328_p13 = pneg %p1327_p10  ;;  %p1334_p0 = por %p1333_p7, %p1332_p8 }
  0x6e   : > { %p1335_p3 = pnand %p1334_p0, %p1328_p13 }
  0x70   : > { %1338 = shalt.err (!%p1335_p3)
}
  0x71   : > { %p1890_p5 = scmp.ne.s32.totalorder %s1883_s12, 0  ;;  %s984_s0 = sshll.u32 %s1455_s22, 12 }
  0x72   : > { %s1693_s16 = scalar_lea.hbm %s1861_s4, %s984_s0  ;;  %s287_s25 = scalar_lea.vmem [#allocation9], %s963_s10 }
  0x73   : > { %1114 = dma.hbm_to_vmem [thread:$0]  (!%p1890_p5), %s1644_s28, 256, %s277_s13, %s1594_s27  }
  0x74   : > { %s296_s11 = sshll.u32 %s287_s25, 4  ;;  %s284_s14 = scalar_lea.sflag [#allocation10], %s1572_s9  ;;  %s1697_s11 = int_to_ptr.vmem [resolvable:$true] %s296_s11 }
  0x75   : > { %s1339_s1 = scalar_lea.hbm %s1693_s16, 4096  ;;  %s1344_s13 = scalar_lea.hbm %s1861_s4, 8192 }
  0x76   : > { %p1340_p0 = scmp.ne.s32.totalorder %s1693_s16, %s1339_s1  ;;  %p1345_p12 = scmp.lt.u32.totalorder %s1693_s16, %s1861_s4 }
  0x77   : > { %p1346_p4 = scmp.lt.u32.totalorder %s1344_s13, %s1339_s1  ;;  %p1348_p11 = scmp.lt.u32.totalorder %s1339_s1, %s1693_s16 }
  0x78   : > { %p1342_p1 = pnand %p1340_p0, %p1600_p2 }
  0x79   : > { %p1347_p9 = por %p1346_p4, %p1345_p12 }
  0x7a   : > { %p1343_p6 = pneg %p1342_p1 }
  0x7b   : > { %p1349_p10 = por %p1348_p11, %p1347_p9 }
  0x7d   : > { %p1350_p13 = pnand %p1349_p10, %p1343_p6 }
  0x7f   : > { %1353 = shalt.err (!%p1350_p13)
}
  0x80   : > { %s1354_s10 = scalar_lea.vmem %s1697_s11, 4096  ;;  %s1466_s23 = smov [#allocation9]  }
  0x81   : > { %p1355_p8 = scmp.ne.s32.totalorder %s1697_s11, %s1354_s10  ;;  %s1359_s0 = sshll.u32 %s1466_s23, 4  ;;  %s1360_s0 = int_to_ptr.vmem [resolvable:$false] %s1359_s0 }
  0x82   : > { %s1361_s15 = scalar_lea.vmem %s1360_s0, 8192  ;;  %p1362_p0 = scmp.lt.s32.totalorder %s1697_s11, %s1360_s0 }
  0x83   : > { %p1357_p7 = pnand %p1355_p8, %p1600_p2  ;;  %p1363_p1 = scmp.lt.s32.totalorder %s1361_s15, %s1354_s10 }
  0x85   : > { %p1358_p3 = pneg %p1357_p7  ;;  %p1364_p12 = por %p1363_p1, %p1362_p0 }
  0x87   : > { %p1365_p4 = pnand %p1364_p12, %p1358_p3 }
  0x89   : > { %1368 = shalt.err (!%p1365_p4)
}
  0x8a   : > { %s1467_s26 = smov 256   ;;  %s1468_s25 = smov 16  }
  0x8b   : > { %1117 = dma.hbm_to_vmem [thread:$0]  (!%p1890_p5), %s1693_s16, 4096, %s1697_s11, %s284_s14, %s1467_s26, %s1467_s26, %s1468_s25  }
  0x8c   : > { %p1891_p2 = scmp.ne.s32.totalorder %s1886_s17, 0 }
  0x8d   : > { %s1726_s29 = sand.u32 (!%p1891_p2), 1, %s1443_s19   ;;  %p1892_p6 = scmp.ne.s32.totalorder (!%p1891_p2), %s1879_s30, 0 }
  0x8e   : > { %308 = sbr.rel (%p1891_p2) target bundleno = 699 (0x2bb), region = 40  ;;  %s967_s1 = sshll.u32 (!%p1891_p2), %s1726_s29, 3 }
  0x8f   : > { %s311_s27 = scalar_lea.sflag (!%p1891_p2), [#allocation4], %s1726_s29  ;;  %s314_s28 = scalar_lea.vmem (!%p1891_p2), [#allocation3], %s967_s1 }
  0x95   : > { %1422 = dma.done.wait (%p1892_p6), %s311_s27, 128  }
  0x96   : > { %1424 = vsyncadd (%p1892_p6), %s311_s27, 4294967168  ;;  %s319_s9 = sand.u32 1, %s1534_s24   ;;  %s968_s12 = sshll.u32 %s1726_s29, 4 }
  0x97   : > { %s320_s17 = scalar_lea.sflag [#allocation7], %s319_s9  ;;  %s1738_s16 = scalar_lea.vmem [#allocation6], %s968_s12 }
  0x98   : > { %1426 = dma.done.wait (%p1892_p6), %s320_s17, 512  }
  0x99   : > { %1428 = vsyncadd (%p1892_p6), %s320_s17, 4294966784  ;;  %s970_s11 = sshll.u32 %s1726_s29, 8  ;;  %s1745_s14 = scalar_lea.vmem [#allocation8], %s968_s12 }
  0x9a   : > { %s338_s13 = scalar_lea.sflag [#allocation10], %s1726_s29  ;;  %s1748_s20 = scalar_lea.vmem [#allocation9], %s970_s11 }
  0x9b   : > { %1430 = dma.done.wait (%p1892_p6), %s338_s13, 4096  }
  0x9c   : > { %1432 = vsyncadd (%p1892_p6), %s338_s13, 4294963200  ;;  %vm689_vm0 = vcmask 130048   ;;  %v1754_v0 = vld [vmem:[%s314_s28] sm:$0xff]  ;;  %v396_v16 = vld [vmem:[%s1745_s14] sm:$0xff]  ;;  %vm1470_vm1 = vmmov 0   ;;  %p386_p5 = scmp.lt.s32.totalorder %s1451_s21, 1 }
  0x9d   : > { %v690_v1 = vsel %vm689_vm0, %v1754_v0, -inf  ;;  %v1179_v2 = vld [vmem:[%s1748_s20 + $0x4] ss:$16 sps:$4 sm:$0xff]   ;;  %v1181_v3 = vld [vmem:[%s1748_s20 + $0xc] ss:$16 sps:$4 sm:$0xff]   ;;  %v399_v17 = vunpack.c.h.bf16 %v396_v16  ;;  %v398_v26 = vunpack.c.l.bf16 %v396_v16  ;;  %s979_s23 = sshll.u32 %s1451_s21, 7 }
  0x9e   : > { %691 = vmax.xlane.f32.xlu0 %v690_v1  ;;  %v1183_v4 = vld [vmem:[%s1748_s20] ss:$16 sps:$4 sm:$0xff]   ;;  %v1184_v5 = vld [vmem:[%s1748_s20 + $0x8] ss:$16 sps:$4 sm:$0xff]   ;;  %996 = vmatprep.subr.bf16.mxu1 %v1179_v2  ;;  %v1185_v6 = vld [vmem:[%s1748_s20 + $0x24] ss:$16 sps:$4 sm:$0xff]   ;;  %s1808_s27 = scalar_lea.hbm %s1862_s5, %s979_s23 }
  0x9f   : > { %1028 = vmatprep.subr.bf16.mxu0 %v1181_v3  ;;  %998 = vmatpush1.bf16.xpose.msra.mxu1 %v1183_v4  ;;  %v1187_v7 = vld [vmem:[%s1748_s20 + $0x2c] ss:$16 sps:$4 sm:$0xff]   ;;  %v1189_v8 = vld [vmem:[%s1748_s20 + $0x20] ss:$16 sps:$4 sm:$0xff]   ;;  %v1190_v9 = vld [vmem:[%s1748_s20 + $0x28] ss:$16 sps:$4 sm:$0xff]   ;;  %v669_v3 = vlaneseq }
  0xa0   : > { %1030 = vmatpush1.bf16.xpose.msra.mxu0 %v1184_v5  ;;  %1000 = vmatprep.subr.bf16.mxu1 %v1185_v6  ;;  %v1191_v10 = vld [vmem:[%s1748_s20 + $0x44] ss:$16 sps:$4 sm:$0xff]   ;;  %v1193_v11 = vld [vmem:[%s1748_s20 + $0x4c] ss:$16 sps:$4 sm:$0xff]   ;;  %v1195_v12 = vld [vmem:[%s1748_s20 + $0x40] ss:$16 sps:$4 sm:$0xff]  }
  0xa1   : > { %1032 = vmatprep.subr.bf16.mxu0 %v1187_v7  ;;  %v1196_v13 = vld [vmem:[%s1748_s20 + $0x48] ss:$16 sps:$4 sm:$0xff]   ;;  %v1197_v14 = vld [vmem:[%s1748_s20 + $0x64] ss:$16 sps:$4 sm:$0xff]   ;;  %v1199_v15 = vld [vmem:[%s1748_s20 + $0x6c] ss:$16 sps:$4 sm:$0xff]  }
  0xa2   : > { %v397_v18 = vld [vmem:[%s1745_s14 + $0x8] sm:$0xff]  ;;  %v1201_v20 = vld [vmem:[%s1748_s20 + $0x60] ss:$16 sps:$4 sm:$0xff]   ;;  %v973_v21 = vmul.f32 -1.442695, %v399_v17  ;;  %v1469_v1 = vmov 0.0|0.0  }
  0xa3   : > { %v401_v19 = vunpack.c.h.bf16 %v397_v18  ;;  %v1202_v22 = vld [vmem:[%s1748_s20 + $0x68] ss:$16 sps:$4 sm:$0xff]   ;;  %v1203_v23 = vld [vmem:[%s1748_s20 + $0x84] ss:$16 sps:$4 sm:$0xff]   ;;  %v1205_v25 = vld [vmem:[%s1748_s20 + $0x8c] ss:$16 sps:$4 sm:$0xff]   ;;  %v400_v27 = vunpack.c.l.bf16 %v397_v18 }
  0xa4   : > { %1227 = vpow2.f32 %v973_v21  ;;  %v1207_v28 = vld [vmem:[%s1748_s20 + $0x80] ss:$16 sps:$4 sm:$0xff]   ;;  %v1208_v29 = vld [vmem:[%s1748_s20 + $0x88] ss:$16 sps:$4 sm:$0xff]   ;;  %v1209_v30 = vld [vmem:[%s1748_s20 + $0xa4] ss:$16 sps:$4 sm:$0xff]  }
  0xa5   : > { %v975_v24 = vmul.f32 -1.442695, %v401_v19  ;;  %v972_v31 = vmul.f32 -1.442695, %v398_v26  ;;  %v1211_v32 = vld [vmem:[%s1748_s20 + $0xac] ss:$16 sps:$4 sm:$0xff]  }
  0xa6   : > { %v974_v33 = vmul.f32 -1.442695, %v400_v27  ;;  %v1213_v37 = vld [vmem:[%s1748_s20 + $0xa0] ss:$16 sps:$4 sm:$0xff]   ;;  %v1214_v39 = vld [vmem:[%s1748_s20 + $0xa8] ss:$16 sps:$4 sm:$0xff]  }
  0xa7   : > { %1002 = vmatpush1.bf16.xpose.msra.mxu1 %v1189_v8  ;;  %1229 = vpow2.f32 %v975_v24  ;;  %v1215_v40 = vld [vmem:[%s1748_s20 + $0xc4] ss:$16 sps:$4 sm:$0xff]   ;;  %v1217_v41 = vld [vmem:[%s1748_s20 + $0xcc] ss:$16 sps:$4 sm:$0xff]   ;;  %v1219_v44 = vld [vmem:[%s1748_s20 + $0xc0] ss:$16 sps:$4 sm:$0xff]  }
  0xa8   : > { %1034 = vmatpush1.bf16.xpose.msra.mxu0 %v1190_v9  ;;  %1004 = vmatprep.subr.bf16.mxu1 %v1191_v10  ;;  %1231 = vpow2.f32 %v972_v31  ;;  %v1220_v45 = vld [vmem:[%s1748_s20 + $0xc8] ss:$16 sps:$4 sm:$0xff]   ;;  %v1221_v46 = vld [vmem:[%s1748_s20 + $0xe4] ss:$16 sps:$4 sm:$0xff]   ;;  %v1223_v48 = vld [vmem:[%s1748_s20 + $0xec] ss:$16 sps:$4 sm:$0xff]  }
  0xa9   : > { %1036 = vmatprep.subr.bf16.mxu0 %v1193_v11  ;;  %1233 = vpow2.f32 %v974_v33  ;;  %v1225_v52 = vld [vmem:[%s1748_s20 + $0xe0] ss:$16 sps:$4 sm:$0xff]   ;;  %v1226_v53 = vld [vmem:[%s1748_s20 + $0xe8] ss:$16 sps:$4 sm:$0xff]   ;;  %v1471_v2 = vmov 0.0   ;;  %v670_v4 = vand.u32 127, %v669_v3 }
  0xaa   : > { %v701_v61 = vld [vmem:[%s1738_s16] sm:$0xff]  ;;  %v702_v62 = vld [vmem:[%s1738_s16 + $0x8] sm:$0xff]  ;;  %s387_s24 = scalar_select %p386_p5, %s1451_s21, 1 }
  0xab   : > { %v1060_v63 = vpack.c.bf16 %v702_v62, %v701_v61  ;;  %vm671_vm2 = vcmp.eq.s32.totalorder %v670_v4, 3  ;;  %s385_s0 = scalar_lea.vmem [#allocation11], %s967_s1  ;;  %s779_s28 = scalar_lea.sflag [#allocation5], %s1726_s29 }
  0xac   : > { %s388_s10 = scalar_lea.vmem %s1859_s2, %s387_s24  ;;  %s792_s15 = sshll.u32 %s385_s0, 4  ;;  %s1810_s15 = int_to_ptr.vmem [resolvable:$true] %s792_s15 }
  0xad   : > { %s1369_s21 = scalar_lea.vmem %s1810_s15, 128  ;;  %p1893_p11 = scmp.ne.s32.totalorder %s1880_s6, 0 }
  0xae   : > { %v1228_v34 = vpop.eup %1227  ;;  %p1370_p9 = scmp.ne.s32.totalorder %s1810_s15, %s1369_s21  ;;  %s1472_s1 = smov [#allocation11]  }
  0xaf   : > { %1006 = vmatpush1.bf16.xpose.msra.mxu1 %v1195_v12  ;;  %v415_v35 = vadd.f32 1.0, %v1228_v34  ;;  %s1373_s9 = sshll.u32 %s1472_s1, 4  ;;  %s1374_s9 = int_to_ptr.vmem [resolvable:$false] %s1373_s9 }
  0xb0   : > { %1038 = vmatpush1.bf16.xpose.msra.mxu0 %v1196_v13  ;;  %1008 = vmatprep.subr.bf16.mxu1 %v1197_v14  ;;  %v976_v13 = vld [vmem:[%s388_s10] ss:$0 sm:$0xff]  ;;  %p1371_p10 = pnand %p1370_p9, %p1893_p11  ;;  %s1375_s12 = scalar_lea.vmem %s1374_s9, 256 }
  0xb1   : > { %1040 = vmatprep.subr.bf16.mxu0 %v1199_v15  ;;  %v1230_v36 = vpop.eup %1229  ;;  %1235 = vrcp.f32 %v415_v35  ;;  %p1376_p8 = scmp.lt.s32.totalorder %s1810_s15, %s1374_s9  ;;  %p1377_p7 = scmp.lt.s32.totalorder %s1375_s12, %s1369_s21 }
  0xb2   : > { %v417_v38 = vadd.f32 1.0, %v1230_v36  ;;  %v1232_v42 = vpop.eup %1231  ;;  %p1372_p13 = pneg %p1371_p10 }
  0xb3   : > { %v1234_v43 = vpop.eup %1233  ;;  %v414_v49 = vadd.f32 1.0, %v1232_v42  ;;  %p1378_p3 = por %p1377_p7, %p1376_p8 }
  0xb4   : > { %1237 = vrcp.f32 %v417_v38  ;;  %v416_v50 = vadd.f32 1.0, %v1234_v43 }
  0xb5   : > { %1239 = vrcp.f32 %v414_v49  ;;  %p1379_p0 = pnand %p1378_p3, %p1372_p13 }
  0xb6   : > { %1241 = vrcp.f32 %v416_v50 }
  0xb7   : > { %1010 = vmatpush1.bf16.xpose.msra.mxu1 %v1201_v20 }
  0xb8   : > { %1042 = vmatpush1.bf16.xpose.msra.mxu0 %v1202_v22  ;;  %1012 = vmatprep.subr.bf16.mxu1 %v1203_v23 }
  0xb9   : > { %1044 = vmatprep.subr.bf16.mxu0 %v1205_v25 }
  0xbb   : > { %v1236_v47 = vpop.eup %1235 }
  0xbc   : > { %587 = vmatprep.mubr.f32.mxu1 %v1236_v47 }
  0xbe   : > { %v1238_v51 = vpop.eup %1237 }
  0xbf   : > { %1014 = vmatpush1.bf16.xpose.msra.mxu1 %v1207_v28  ;;  %657 = vmatprep.mubr.f32.mxu0 %v1238_v51  ;;  %v1240_v54 = vpop.eup %1239 }
  0xc0   : > { %1046 = vmatpush1.bf16.xpose.msra.mxu0 %v1208_v29  ;;  %1016 = vmatprep.subr.bf16.mxu1 %v1209_v30  ;;  %v1242_v55 = vpop.eup %1241 }
  0xc1   : > { %1048 = vmatprep.subr.bf16.mxu0 %v1211_v32 }
  0xc7   : > { %1018 = vmatpush1.bf16.xpose.msra.mxu1 %v1213_v37 }
  0xc8   : > { %1050 = vmatpush1.bf16.xpose.msra.mxu0 %v1214_v39  ;;  %1020 = vmatprep.subr.bf16.mxu1 %v1215_v40 }
  0xc9   : > { %1052 = vmatprep.subr.bf16.mxu0 %v1217_v41 }
  0xcf   : > { %1022 = vmatpush1.bf16.xpose.msra.mxu1 %v1219_v44 }
  0xd0   : > { %1054 = vmatpush1.bf16.xpose.msra.mxu0 %v1220_v45  ;;  %1024 = vmatprep.subr.bf16.mxu1 %v1221_v46 }
  0xd1   : > { %1056 = vmatprep.subr.bf16.mxu0 %v1223_v48 }
  0xd7   : > { %1026 = vmatpush1.bf16.xpose.msra.mxu1 %v1225_v52 }
  0xd8   : > { %1058 = vmatpush1.bf16.xpose.msra.mxu0 %v1226_v53  ;;  %1059 = vmatprep.subr.bf16.mxu1 %v1469_v1 }
  0xde   : > { %588 = vmatmul.mubr.f32.vlgmr.msra.gmra.mrb[0].mxu1 %v1240_v54 }
  0xdf   : > { %658 = vmatmul.mubr.f32.vlgmr.msra.gmra.mrb[0].mxu0 %v1242_v55  ;;  %1061 = vmatpush3.bf16.msra.mxu1 %v1060_v63 }
  0xe0   : > { %992 = vmatprep.mubr.msk.f32.mxu1 %vm1470_vm1, %v1471_v2 }
 0x12b   : > { %v692_v56 = vpop.xlane.xlu0 %691 }
 0x12c   : > { %v693_v57 = vsub.f32 %v1754_v0, %v692_v56 }
 0x12e   : > { %v694_v58 = vmul.f32 1.442695, %v693_v57 }
 0x130   : > { %1243 = vpow2.f32 %v694_v58 }
 0x13a   : > { %v1244_v59 = vpop.eup %1243 }
 0x13b   : > { %v696_v60 = vsel %vm689_vm0, %v1244_v59, 0.0 }
 0x13c   : > { %697 = vadd.xlane.f32.xlu0 %v696_v60 }
 0x1b1   : > { %v589_v0 = vpop.f32.mrb[0].mxu1 }
 0x1b2   : > { %v659_v5 = vpop.f32.mrb[0].mxu0  ;;  %v591_v6 = vpop.f32.mrb[1].mxu1 }
 0x1b3   : > { %v660_v7 = vadd.f32 %v659_v5, %v589_v0  ;;  %v661_v8 = vpop.f32.mrb[1].mxu0 }
 0x1b5   : > { %v672_v9 = vsel %vm671_vm2, %v660_v7, 0.0  ;;  %v683_v17 = vmul.f32 2.0, %v660_v7 }
 0x1b6   : > { %673 = vadd.xlane.f32.xlu1 %v672_v9 }
 0x1b7   : > { %v684_v19 = vadd.f32 1.0, %v683_v17 }
 0x1c9   : > { %v698_v10 = vpop.xlane.xlu0 %697 }
 0x1ca   : > { %1245 = vrcp.f32 %v698_v10 }
 0x1d4   : > { %v1246_v11 = vpop.eup %1245 }
 0x1d5   : > { %v700_v12 = vmul.f32 %v1246_v11, %v1244_v59 }
 0x1d7   : > { %993 = vmatmul.mubr.msk.f32.vlgmr.msra.gmra.mrb[2].mxu1 %vm689_vm0, %v700_v12 }
 0x243   : > { %v674_v14 = vpop.xlane.xlu1 %673 }
 0x244   : > { %v682_v15 = vadd.f32 %v976_v13, %v674_v14 }
 0x246   : > { %v685_v16 = vadd.f32 1.0, %v682_v15 }
 0x248   : > { %1247 = vrcp.f32 %v685_v16 }
 0x252   : > { %v1248_v18 = vpop.eup %1247 }
 0x253   : > { %v687_v20 = vmul.f32 %v1248_v18, %v684_v19 }
 0x2aa   : > { %v772_v21 = vpop.f32.mrb[2].mxu1 }
 0x2ab   : > { %v776_v22 = vadd.f32 %v772_v21, %v687_v20  ;;  %v994_v23 = vpop.f32.mrb[3].mxu1 }
 0x2ad   : > { %777 = vst [vmem:[%s385_s0] sm:$0xff] %v776_v22 }
 0x2ae   : > { %1382 = shalt.err (!%p1379_p0)
}
 0x2af   : > { %s1383_s29 = scalar_lea.hbm %s1808_s27, 128  ;;  %s1387_s11 = scalar_lea.hbm %s1862_s5, 256 }
 0x2b0   : > { %p1384_p1 = scmp.ne.s32.totalorder %s1808_s27, %s1383_s29  ;;  %p1388_p2 = scmp.lt.u32.totalorder %s1808_s27, %s1862_s5 }
 0x2b1   : > { %p1389_p6 = scmp.lt.u32.totalorder %s1387_s11, %s1383_s29  ;;  %p1391_p9 = scmp.lt.u32.totalorder %s1383_s29, %s1808_s27 }
 0x2b2   : > { %p1385_p12 = pnand %p1384_p1, %p1893_p11 }
 0x2b3   : > { %p1390_p5 = por %p1389_p6, %p1388_p2 }
 0x2b4   : > { %p1386_p4 = pneg %p1385_p12 }
 0x2b5   : > { %p1392_p10 = por %p1391_p9, %p1390_p5 }
 0x2b7   : > { %p1393_p13 = pnand %p1392_p10, %p1386_p4 }
 0x2b9   : > { %1396 = shalt.err (!%p1393_p13)
}
 0x2ba   : > { %1103 = dma.vmem_to_hbm [thread:$0]  (%p1893_p11), %s1810_s15, 128, %s1808_s27, %s779_s28  }
 0x2bb PF: > { %s1894_s20 = sld [smem:[#allocation17_spill]]  ;;  %s804_s24 = sand.u32 1, %s1439_s18  }
 0x2bc   : > { %p1895_p8 = scmp.ne.s32.totalorder %s1882_s8, 0  ;;  %s805_s30 = scalar_lea.sflag [#allocation5], %s804_s24 }
 0x2c1   : > { %p1896_p7 = scmp.ge.s32.totalorder %s1894_s20, 2 }
 0x2c3   : > { %p1119_p3 = pnand %p1896_p7, %p1895_p8 }
 0x2c5   : > { %1434 = dma.done.wait (!%p1119_p3), %s805_s30, 128  }
 0x2c6   : > { %1436 = vsyncadd (!%p1119_p3), %s805_s30, 4294967168  ;;  %s27_s23 = sadd.s32 1, %s1894_s20   ;;  %s1897_s7 = sld [smem:[#allocation16_spill]] }
 0x2c7   : > { %p24_p0 = scmp.ge.s32.totalorder %s27_s23, 4   ;;  %s1898_s20 = sld [smem:[#allocation19_spill]] }
 0x2c8   : > { %s1899_s6 = sld [smem:[#allocation18_spill]]  ;;  %s1900_s18 = smov %s1443_s19 }
 0x2c9   : > { %s1902_s21 = smov %s1455_s22  ;;  %26 = sbr.rel (!%p24_p0) target bundleno = 13 (0xd), region = 133 }
 0x2cc   : > { %s1901_s19 = smov %s1897_s7 }
 0x2ce   : > { %s1903_s22 = smov %s1899_s6 }
 0x2d0   :  { %810 = vsyncpa [#allocation4], 1 }
 0x2d1   :  { %812 = vsyncpa [#allocation4 + $0x1], 1 }
 0x2d2   :  { %813 = vsyncpa [#allocation7], 1 }
 0x2d3   :  { %815 = vsyncpa [#allocation7 + $0x1], 1 }
 0x2d4   :  { %816 = vsyncpa [#allocation10], 1 }
 0x2d5   :  { %818 = vsyncpa [#allocation10 + $0x1], 1 }
 0x2d6   :  { %819 = vsyncpa [#allocation5], 1 }
 0x2d7   :  { %821 = vsyncpa [#allocation5 + $0x1], 1 }

</bundles_post_ra>
